<compile_context>
chip_gen: v6e
topology: v6e:2x2x1
jax: 0.10.0
libtpu: 0.0.40
codegen_flags: <defaults>
</compile_context>

<pallas_src>
import math

import jax
import jax.numpy as jnp
from jax.experimental import pallas as pl
from jax.experimental.pallas import tpu as pltpu


def _round_up(v, m):
    return (v + m - 1) // m * m


# ----------------------------- Pallas kernel -------------------------------

def _score_kernel(x_ref, w_ref, score_ref):
    """Projection score for one tile of nodes.

    x_ref:     (TM, H) VMEM tile of node features
    w_ref:     (1, H)  VMEM pre-normalized projection weight (w / ||w||)
    score_ref: (TM, 1) VMEM output tile: score = sum(x * w, axis=-1)
    """
    x = x_ref[...]
    w = w_ref[...]
    # VPU broadcast-mul + XLU lane reduce; a (TM,H)x(H,1) MXU matmul would use
    # <1% of the MXU and only pay result-FIFO latency for no FLOPs.
    score_ref[...] = jnp.sum(x * w, axis=-1, keepdims=True)


def topk_scores(x, w, *, tile_m=2048):
    """Normalized projection scores (x @ w) / ||w|| via a tiled Pallas kernel.

    x: (N, H) float32, w: (H, 1) float32 -> (N,) float32
    """
    n, h = x.shape
    # Fold 1/||w|| into the weight once (hoisted out of the pipelined loop).
    w_row = w.reshape(1, h).astype(jnp.float32)
    w_row = w_row / jnp.linalg.norm(w_row)

    tm = min(int(tile_m), _round_up(n, 8))          # rows per tile, multiple of 8
    n_pad = _round_up(n, tm)
    if n_pad != n:
        x = jnp.pad(x, ((0, n_pad - n), (0, 0)))

    # TODO(synk): with H=32 each (8,128) VMEM tile is 75% lane padding; a
    # wrapper-side repack of x into a lane-dense (N/4, 128) slab with a 4-way
    # segmented reduce (and a lane-dense (1, TM) score block) would quadruple
    # effective tile density.
    score = pl.pallas_call(
        _score_kernel,
        out_shape=jax.ShapeDtypeStruct((n_pad, 1), jnp.float32),
        grid=(n_pad // tm,),
        in_specs=[
            pl.BlockSpec((tm, h), lambda i: (i, 0)),   # x tile, streamed over N
            pl.BlockSpec((1, h), lambda i: (0, 0)),    # normalized weight, resident
        ],
        out_specs=pl.BlockSpec((tm, 1), lambda i: (i, 0)),
        compiler_params=pltpu.CompilerParams(
            # parallel -> row tiles shard across both TCs on v7x; neutral on v5e/v6e
            dimension_semantics=("parallel",),
        ),
    )(x, w_row)
    return score[:n, 0]


# ------------------------------ PoolingOp ----------------------------------

class PoolingOpPallas:
    """JAX/Pallas equivalent of PoolingOp(primitive='topkpool', hidden, ratio)."""

    def __init__(self, primitive, hidden, ratio, num_nodes=0, *, key):
        assert primitive == "topkpool"
        self.primitive = primitive
        self.hidden = hidden
        self.ratio = ratio
        # Deterministic init (matches TopKPooling's uniform(-1/sqrt(H), 1/sqrt(H))).
        bound = 1.0 / math.sqrt(hidden)
        self.weight = jax.random.uniform(
            key, (hidden, 1), jnp.float32, minval=-bound, maxval=bound
        )

    def __call__(self, x, edge_index, edge_weights, data, batch, mask,
                 *, num_graphs=None):
        n, h = x.shape
        if num_graphs is None:
            # NOTE: forces a device->host sync; pass num_graphs statically when
            # running under jax.jit.
            num_graphs = int(batch.max()) + 1

        # ---- Pallas hot path: projection scores (reads full N x H once) -----
        score = topk_scores(x, self.weight)                     # (N,)

        # ---- batched per-graph top-k (plain-JAX glue) ------------------------
        # Assumes equal-sized, contiguously batched graphs (synthetic setup),
        # so k is static and the (G, nodes_per_graph) reshape is valid.
        nodes_per_graph = n // num_graphs
        k = int(math.ceil(self.ratio * nodes_per_graph))
        _, idx = jax.lax.top_k(score.reshape(num_graphs, nodes_per_graph), k)
        offsets = jnp.arange(num_graphs, dtype=jnp.int32)[:, None] * nodes_per_graph
        perm = (idx.astype(jnp.int32) + offsets).reshape(-1)    # (G*k,)

        # ---- gather + tanh gating fused: only k rows are read & written -----
        gate = jnp.tanh(score[perm])                            # (G*k,)
        new_x = x[perm] * gate[:, None]                         # == x[perm]*tanh(score[perm])
        new_batch = batch[perm]

        # ---- edge filtering / relabelling (data-dependent, plain JAX) --------
        # TODO(synk): PyTorch returns a variable-length edge_index; with static
        # shapes we keep the original edge count and mark dropped edges as -1.
        new_id = (
            jnp.full((n,), -1, jnp.int32)
            .at[perm]
            .set(jnp.arange(perm.shape[0], dtype=jnp.int32))
        )
        src, dst = edge_index[0], edge_index[1]
        keep = (new_id[src] >= 0) & (new_id[dst] >= 0)
        new_edge_index = jnp.where(
            keep[None, :],
            jnp.stack([new_id[src], new_id[dst]], axis=0),
            -1,
        )

        return new_x, new_edge_index, new_batch, None


# --------------------------------- main -------------------------------------

if __name__ == "__main__":
    key = jax.random.PRNGKey(0)
    k_x, k_e, k_w = jax.random.split(key, 3)

    # Small synthetic graph batch: 2 graphs x 8 nodes, hidden = 32, 24 edges.
    N, H, B, E = 16, 32, 2, 24
    nodes_per_graph = N // B

    x = jax.random.normal(k_x, (N, H), jnp.float32)
    batch = jnp.repeat(jnp.arange(B, dtype=jnp.int32), nodes_per_graph)

    # Edges confined within each graph.
    e_graph = jax.random.randint(k_e, (E,), 0, B)
    k_s, k_d = jax.random.split(k_e)
    src = jax.random.randint(k_s, (E,), 0, nodes_per_graph) + e_graph * nodes_per_graph
    dst = jax.random.randint(k_d, (E,), 0, nodes_per_graph) + e_graph * nodes_per_graph
    edge_index = jnp.stack([src, dst], axis=0).astype(jnp.int32)
    edge_weights = jnp.ones((E,), jnp.float32)

    op = PoolingOpPallas("topkpool", hidden=H, ratio=0.5, num_nodes=N, key=k_w)
    new_x, new_edge_index, new_batch, _ = op(
        x, edge_index, edge_weights, data=None, batch=batch, mask=None,
        num_graphs=B,
    )
    jax.block_until_ready((new_x, new_edge_index, new_batch))

    # ---- correctness checks -------------------------------------------------
    # 1) Pallas score kernel vs plain-JAX reference.
    w = op.weight
    ref_score = (x @ w)[:, 0] / jnp.linalg.norm(w)
    score = topk_scores(x, w)
    assert jnp.allclose(score, ref_score, atol=1e-5), "score mismatch"

    # 2) Batched top-k + fused gather/gate vs per-graph masked reference
    #    (same score, so ordering / tie-breaks are identical).
    k = int(math.ceil(op.ratio * nodes_per_graph))
    ref_perm = []
    for g in range(B):
        masked = jnp.where(batch == g, score, -jnp.inf)
        _, idx = jax.lax.top_k(masked, k)
        ref_perm.append(idx)
    ref_perm = jnp.concatenate(ref_perm)
    ref_new_x = x[ref_perm] * jnp.tanh(score[ref_perm])[:, None]
    assert jnp.allclose(new_x, ref_new_x, atol=1e-5), "new_x mismatch"
    assert new_x.shape == (B * k, H)
    assert new_batch.shape == (B * k,)
    assert new_edge_index.shape == (2, E)

    print("KERNEL_OK")
</pallas_src>

<mosaic_0001>
module attributes {stable_mosaic.version = 11 : i64} {
  func.func @_score_kernel(%arg0: i32, %arg1: memref<16x32xf32, #tpu.memory_space<vmem>>, %arg2: memref<1x32xf32, #tpu.memory_space<vmem>>, %arg3: memref<16x1xf32, #tpu.memory_space<vmem>>) attributes {dimension_semantics = [#tpu.dimension_semantics<parallel>], iteration_bounds = array<i64: 1>, scalar_prefetch = 0 : i64, scratch_operands = 0 : i64, tpu.core_type = #tpu.core_type<tc>, window_params = [{transform_indices = @transform_0, window_bounds = array<i64: 16, 32>}, {pipeline_mode = #tpu.pipeline_mode<synchronous>, transform_indices = @transform_1, window_bounds = array<i64: 1, 32>}, {transform_indices = @transform_2, window_bounds = array<i64: 16, 1>}]} {
    %c0 = arith.constant 0 : index
    %c0_0 = arith.constant 0 : index
    %0 = vector.load %arg1[%c0, %c0_0] : memref<16x32xf32, #tpu.memory_space<vmem>>, vector<16x32xf32>
    %c0_1 = arith.constant 0 : index
    %c0_2 = arith.constant 0 : index
    %1 = vector.load %arg2[%c0_1, %c0_2] : memref<1x32xf32, #tpu.memory_space<vmem>>, vector<1x32xf32>
    %2 = vector.broadcast %1 : vector<1x32xf32> to vector<16x32xf32>
    %3 = arith.mulf %0, %2 : vector<16x32xf32>
    %cst = arith.constant dense<0.000000e+00> : vector<16xf32>
    %4 = vector.multi_reduction <add>, %3, %cst [1] : vector<16x32xf32> to vector<16xf32>
    %5 = vector.shape_cast %4 : vector<16xf32> to vector<16x1xf32>
    %c0_3 = arith.constant 0 : index
    %c0_4 = arith.constant 0 : index
    %6 = vector.load %arg3[%c0_3, %c0_4] : memref<16x1xf32, #tpu.memory_space<vmem>>, vector<16x1xf32>
    tpu.vector_store %arg3[%c0_3, %c0_4], %5 {strides = array<i32>} : memref<16x1xf32, #tpu.memory_space<vmem>>, vector<16x1xf32>,
    return
  }
  func.func @transform_0(%arg0: i32) -> (i32, i32) {
    %c0_i32 = arith.constant 0 : i32
    %c0_i32_0 = arith.constant 0 : i32
    return %arg0, %c0_i32 : i32, i32
  }
  func.func @transform_1(%arg0: i32) -> (i32, i32) {
    %c0_i32 = arith.constant 0 : i32
    %c0_i32_0 = arith.constant 0 : i32
    %c0_i32_1 = arith.constant 0 : i32
    return %c0_i32, %c0_i32_0 : i32, i32
  }
  func.func @transform_2(%arg0: i32) -> (i32, i32) {
    %c0_i32 = arith.constant 0 : i32
    %c0_i32_0 = arith.constant 0 : i32
    return %arg0, %c0_i32 : i32, i32
  }
}

</mosaic_0001>

<bundles_post_ra>
// kernel: tpu_custom_call.1
= control target key start
LH: loop header
LB: loop body
LE: loop exit
PB: predicated region body
PF: predicated region fallthrough
CT: control target
= control target key end

     0   :  { %7 = vsyncpa [#allocation3], 0  ;;  %s77_s9 = smov [#allocation2]   ;;  %s107_s0 = inlined_call_operand.hbm [shape: f32[16,32], index: 0, kind: input, shape index: {}]   ;;  %s108_s1 = inlined_call_operand.vmem [shape: f32[1,32], index: 1, kind: input, shape index: {}]   ;;  %s109_s2 = inlined_call_operand.vmem [shape: f32[16,1], index: 2, kind: output, shape index: {}]  }
   0x1   :  { %s13_s10 = sshll.u32 %s77_s9, 4  ;;  %s14_s10 = int_to_ptr.vmem [resolvable:$true] %s13_s10 }
   0x2   :  { %s63_s11 = scalar_lea.vmem %s14_s10, 256  ;;  %p68_p1 = scmp.lt.s32.totalorder %s14_s10, %s14_s10 }
   0x3   :  { %p64_p0 = scmp.ne.s32.totalorder %s14_s10, %s63_s11  ;;  %p69_p2 = scmp.lt.s32.totalorder %s63_s11, %s63_s11 }
   0x5   :  { %p70_p3 = por %p69_p2, %p68_p1 }
   0x7   :  { %p71_p4 = pnand %p70_p3, %p64_p0 }
   0x9   :  { %74 = shalt.err (!%p71_p4)
}
   0xa   :  { %s78_s12 = smov 128   ;;  %s79_s13 = smov 8  }
   0xb   :  { %19 = dma.hbm_to_vmem [thread:$0]  %s107_s0, 256, %s14_s10, [#allocation3], %s78_s12, %s78_s12, %s79_s13  }
   0xc   :  { %75 = dma.done.wait [#allocation3], 256  }
   0xd   :  { %76 = vsyncadd [#allocation3], 4294967040  ;;  %v25_v0 = vld [vmem:[#allocation2] sm:$0xff]  ;;  %vm36_vm0 = vcmask 261120   ;;  %v26_v2 = vld [vmem:[#allocation2 + $0x8] sm:$0xff]  ;;  %vm43_vm1 = vcmask 7168  }
   0xe   :  { %v51_v1 = vld [vmem:[%s108_s1] ss:$0 sm:$0xff] }
   0xf   :  { %v34_v3 = vmul.f32 %v51_v1, %v25_v0  ;;  %v35_v4 = vmul.f32 %v51_v1, %v26_v2 }
  0x11   :  { %v37_v5 = vsel %vm36_vm0, %v34_v3, 0.0  ;;  %v40_v6 = vsel %vm36_vm0, %v35_v4, 0.0 }
  0x12   :  { %38 = vadd.xlane.f32.xlu0 %v37_v5 }
  0x16   :  { %41 = vadd.xlane.f32.xlu0 %v40_v6 }
  0x9b   :  { %v39_v7 = vpop.xlane.xlu0 %38 }
  0x9c   :  { %44 = vst.msk [vmem:[%s109_s2] sm:$0xff] %vm43_vm1, %v39_v7 }
  0x9f   :  { %v42_v8 = vpop.xlane.xlu0 %41 }
  0xa0   :  { %45 = vst.msk [vmem:[%s109_s2 + $0x8] sm:$0xff] %vm43_vm1, %v42_v8 }
  0xa1   :  { %50 = vsyncpa [#allocation3], 1 }

</bundles_post_ra>
